<compile_context>
chip_gen: v6e
topology: v6e:2x2x1
jax: 0.10.0
libtpu: 0.0.40
codegen_flags: <defaults>
</compile_context>

<pallas_src>
import jax
import jax.numpy as jnp
from jax.experimental import pallas as pl
from jax.experimental.pallas import tpu as pltpu


def _round_up(x, m):
    return (x + m - 1) // m * m


def seg_kernel(x_ref, w_ref, b_ref, pt_ref, o_ref):
    """Fused patch-embed matmul + bias + ReLU + prompt-token mask head.

    x_ref : (TM, PDp)  bf16 im2col patch rows (zero padded)
    w_ref : (PDp, Dp)  bf16 patch-embedding weight (zero padded)
    b_ref : (1, Dp)    f32  patch-embedding bias (zero padded)
    pt_ref: (Dp, Kp)   bf16 prompt tokens, pre-transposed & zero padded
    o_ref : (TM, Kp)   f32  per-token, per-class mask logits
    """
    feat = jnp.dot(x_ref[...], w_ref[...], preferred_element_type=jnp.float32)
    feat = jnp.maximum(feat + b_ref[...], 0.0)  # bias + ReLU in f32
    # mask logit = <image feature, prompt token>  (plain A @ B on the MXU)
    o_ref[...] = jnp.dot(
        feat.astype(pt_ref.dtype), pt_ref[...],
        preferred_element_type=jnp.float32,
    )


def segmentation_forward(images, w_embed, b_embed, prompts, patch=4):
    """images: [B, C, H, W] float32 (NCHW). Returns mask logits [B, K, H/P, W/P]."""
    B, C, H, W = images.shape
    P = patch
    Hp, Wp = H // P, W // P
    K, D = prompts.shape
    patch_dim = C * P * P

    # --- glue: im2col (NCHW -> [B*Np, C*P*P]) ---
    # TODO(synk): for real SAM-scale images (1024x1024) fuse the im2col into
    # the kernel's BlockSpec/DMA pattern to avoid the extra HBM round trip of
    # this transposed copy; at demo scale it is negligible.
    x = images.reshape(B, C, Hp, P, Wp, P)
    x = jnp.transpose(x, (0, 2, 4, 1, 3, 5)).reshape(B * Hp * Wp, patch_dim)
    M = x.shape[0]

    # Lane-dense / MXU-friendly padding: last dims -> multiples of 128.
    PDp = _round_up(patch_dim, 128)
    Dp = _round_up(D, 128)
    Kp = _round_up(K, 128)

    # Row tile: single grid step for small problems, 512-row tiles otherwise.
    # (On v7x with large M this still yields >=2 balanced steps for its 2 TCs.)
    tm = min(_round_up(M, 8), 512)
    Mp = _round_up(M, tm)

    # bf16 operands (f32 accumulate inside the kernel); bias stays f32.
    x_p = jnp.zeros((Mp, PDp), jnp.bfloat16).at[:M, :patch_dim].set(
        x.astype(jnp.bfloat16))
    w_p = jnp.zeros((PDp, Dp), jnp.bfloat16).at[:patch_dim, :D].set(
        w_embed.astype(jnp.bfloat16))
    b_p = jnp.zeros((1, Dp), jnp.float32).at[:, :D].set(
        b_embed.astype(jnp.float32))
    # prompts pre-transposed (K, D) -> (Dp, Kp) so no in-kernel transpose.
    pt_p = jnp.zeros((Dp, Kp), jnp.bfloat16).at[:D, :K].set(
        prompts.T.astype(jnp.bfloat16))

    # Note: w/b/prompt index_maps are constant, so they are DMA'd once and stay
    # resident; at SAM-scale D consider pipeline_mode / vmem_limit_bytes tuning
    # (v7x has only 64 MiB VMEM).
    logits = pl.pallas_call(
        seg_kernel,
        out_shape=jax.ShapeDtypeStruct((Mp, Kp), jnp.float32),
        grid=(Mp // tm,),
        in_specs=[
            pl.BlockSpec((tm, PDp), lambda i: (i, 0)),
            pl.BlockSpec((PDp, Dp), lambda i: (0, 0)),
            pl.BlockSpec((1, Dp), lambda i: (0, 0)),
            pl.BlockSpec((Dp, Kp), lambda i: (0, 0)),
        ],
        out_specs=pl.BlockSpec((tm, Kp), lambda i: (i, 0)),
        compiler_params=pltpu.CompilerParams(
            dimension_semantics=("parallel",),
        ),
    )(x_p, w_p, b_p, pt_p)

    # --- glue: strip padding, back to NCHW-style mask logits [B, K, Hp, Wp] ---
    logits = logits[:M, :K].reshape(B, Hp, Wp, K)
    return jnp.transpose(logits, (0, 3, 1, 2))


def reference_forward(images, w_embed, b_embed, prompts, patch=4):
    B, C, H, W = images.shape
    P = patch
    Hp, Wp = H // P, W // P
    x = images.reshape(B, C, Hp, P, Wp, P)
    x = jnp.transpose(x, (0, 2, 4, 1, 3, 5)).reshape(B * Hp * Wp, C * P * P)
    feat = jnp.maximum(x @ w_embed + b_embed, 0.0)
    logits = feat @ prompts.T
    return jnp.transpose(logits.reshape(B, Hp, Wp, -1), (0, 3, 1, 2))


if __name__ == "__main__":
    # Small shapes consistent with the module's forward:
    #   batch['images'] : [B=2, C=4, H=16, W=16]
    #   learnable_prompts[dataset] : [num_classes=4, D=32]
    B, C, H, W = 2, 4, 16, 16
    P = 4
    D = 32
    K = 4  # num_classes
    patch_dim = C * P * P

    key = jax.random.PRNGKey(0)
    k_img, k_w, k_b, k_p = jax.random.split(key, 4)

    images = jax.random.normal(k_img, (B, C, H, W), dtype=jnp.float32)
    # deterministic synthetic parameters (the module __init__ would build the
    # SAM encoder + ParameterDict of prompts; we init equivalents in-script)
    w_embed = jax.random.normal(k_w, (patch_dim, D), dtype=jnp.float32) * 0.05
    b_embed = jax.random.normal(k_b, (1, D), dtype=jnp.float32) * 0.01
    prompts = jax.random.normal(k_p, (K, D), dtype=jnp.float32) * 0.1

    out = segmentation_forward(images, w_embed, b_embed, prompts, patch=P)
    out = jax.block_until_ready(out)

    ref = reference_forward(images, w_embed, b_embed, prompts, patch=P)
    assert out.shape == (B, K, H // P, W // P), out.shape
    # bf16 operands inside the kernel -> looser tolerance vs f32 reference.
    assert jnp.allclose(out, ref, atol=3e-2, rtol=3e-2), "mismatch vs reference"

    print("KERNEL_OK")
</pallas_src>

<mosaic_0001>
module attributes {stable_mosaic.version = 11 : i64} {
  func.func @seg_kernel(%arg0: i32, %arg1: memref<32x128xbf16, #tpu.memory_space<vmem>>, %arg2: memref<128x128xbf16, #tpu.memory_space<vmem>>, %arg3: memref<1x128xf32, #tpu.memory_space<vmem>>, %arg4: memref<128x128xbf16, #tpu.memory_space<vmem>>, %arg5: memref<32x128xf32, #tpu.memory_space<vmem>>) attributes {dimension_semantics = [#tpu.dimension_semantics<parallel>], iteration_bounds = array<i64: 1>, scalar_prefetch = 0 : i64, scratch_operands = 0 : i64, tpu.core_type = #tpu.core_type<tc>, window_params = [{transform_indices = @transform_0, window_bounds = array<i64: 32, 128>}, {pipeline_mode = #tpu.pipeline_mode<synchronous>, transform_indices = @transform_1, window_bounds = array<i64: 128, 128>}, {pipeline_mode = #tpu.pipeline_mode<synchronous>, transform_indices = @transform_2, window_bounds = array<i64: 1, 128>}, {pipeline_mode = #tpu.pipeline_mode<synchronous>, transform_indices = @transform_3, window_bounds = array<i64: 128, 128>}, {transform_indices = @transform_4, window_bounds = array<i64: 32, 128>}]} {
    %c0 = arith.constant 0 : index
    %c0_0 = arith.constant 0 : index
    %0 = vector.load %arg1[%c0, %c0_0] : memref<32x128xbf16, #tpu.memory_space<vmem>>, vector<32x128xbf16>
    %c0_1 = arith.constant 0 : index
    %c0_2 = arith.constant 0 : index
    %1 = vector.load %arg2[%c0_1, %c0_2] : memref<128x128xbf16, #tpu.memory_space<vmem>>, vector<128x128xbf16>
    %cst = arith.constant dense<0.000000e+00> : vector<32x128xf32>
    %2 = tpu.matmul %0, %1, %cst {dimension_numbers = #tpu.dot_dimension_numbers<[1], [0], [0], [1], [0, 0, 1, 1], [], []>} : vector<32x128xbf16>, vector<128x128xbf16>, vector<32x128xf32> -> vector<32x128xf32>
    %c0_3 = arith.constant 0 : index
    %c0_4 = arith.constant 0 : index
    %3 = vector.load %arg3[%c0_3, %c0_4] : memref<1x128xf32, #tpu.memory_space<vmem>>, vector<1x128xf32>
    %4 = vector.broadcast %3 : vector<1x128xf32> to vector<32x128xf32>
    %5 = arith.addf %2, %4 : vector<32x128xf32>
    %cst_5 = arith.constant 0.000000e+00 : f32
    %6 = vector.broadcast %cst_5 : f32 to vector<32x128xf32>
    %7 = arith.maximumf %5, %6 : vector<32x128xf32>
    %8 = arith.truncf %7 : vector<32x128xf32> to vector<32x128xbf16>
    %c0_6 = arith.constant 0 : index
    %c0_7 = arith.constant 0 : index
    %9 = vector.load %arg4[%c0_6, %c0_7] : memref<128x128xbf16, #tpu.memory_space<vmem>>, vector<128x128xbf16>
    %cst_8 = arith.constant dense<0.000000e+00> : vector<32x128xf32>
    %10 = tpu.matmul %8, %9, %cst_8 {dimension_numbers = #tpu.dot_dimension_numbers<[1], [0], [0], [1], [0, 0, 1, 1], [], []>} : vector<32x128xbf16>, vector<128x128xbf16>, vector<32x128xf32> -> vector<32x128xf32>
    %c0_9 = arith.constant 0 : index
    %c0_10 = arith.constant 0 : index
    %11 = vector.load %arg5[%c0_9, %c0_10] : memref<32x128xf32, #tpu.memory_space<vmem>>, vector<32x128xf32>
    tpu.vector_store %arg5[%c0_9, %c0_10], %10 {strides = array<i32>} : memref<32x128xf32, #tpu.memory_space<vmem>>, vector<32x128xf32>,
    return
  }
  func.func @transform_0(%arg0: i32) -> (i32, i32) {
    %c0_i32 = arith.constant 0 : i32
    %c0_i32_0 = arith.constant 0 : i32
    return %arg0, %c0_i32 : i32, i32
  }
  func.func @transform_1(%arg0: i32) -> (i32, i32) {
    %c0_i32 = arith.constant 0 : i32
    %c0_i32_0 = arith.constant 0 : i32
    %c0_i32_1 = arith.constant 0 : i32
    return %c0_i32, %c0_i32_0 : i32, i32
  }
  func.func @transform_2(%arg0: i32) -> (i32, i32) {
    %c0_i32 = arith.constant 0 : i32
    %c0_i32_0 = arith.constant 0 : i32
    %c0_i32_1 = arith.constant 0 : i32
    return %c0_i32, %c0_i32_0 : i32, i32
  }
  func.func @transform_3(%arg0: i32) -> (i32, i32) {
    %c0_i32 = arith.constant 0 : i32
    %c0_i32_0 = arith.constant 0 : i32
    %c0_i32_1 = arith.constant 0 : i32
    return %c0_i32, %c0_i32_0 : i32, i32
  }
  func.func @transform_4(%arg0: i32) -> (i32, i32) {
    %c0_i32 = arith.constant 0 : i32
    %c0_i32_0 = arith.constant 0 : i32
    return %arg0, %c0_i32 : i32, i32
  }
}

</mosaic_0001>

<bundles_post_ra>
// kernel: tpu_custom_call.1
= control target key start
LH: loop header
LB: loop body
LE: loop exit
PB: predicated region body
PF: predicated region fallthrough
CT: control target
= control target key end

     0   :  { %9 = vsyncpa [#allocation3], 0  ;;  %s576_s0 = inlined_call_operand.hbm [shape: bf16[32,128], index: 0, kind: input, shape index: {}]   ;;  %s577_s1 = inlined_call_operand.hbm [shape: bf16[128,128], index: 1, kind: input, shape index: {}]   ;;  %s578_s2 = inlined_call_operand.vmem [shape: f32[1,128], index: 2, kind: input, shape index: {}]   ;;  %s579_s3 = inlined_call_operand.hbm [shape: bf16[128,128], index: 3, kind: input, shape index: {}]   ;;  %s580_s4 = inlined_call_operand.hbm [shape: f32[32,128], index: 4, kind: output, shape index: {}]  }
   0x1   :  { %10 = vsyncpa [#allocation6], 0 }
   0x2   :  { %11 = vsyncpa [#allocation4], 0  ;;  %s528_s15 = smov [#allocation5]   ;;  %s529_s17 = smov [#allocation2]  }
   0x3   :  { %s29_s16 = sshll.u32 %s528_s15, 4  ;;  %s17_s18 = sshll.u32 %s529_s17, 4  ;;  %s30_s16 = int_to_ptr.vmem [resolvable:$true] %s29_s16  ;;  %s18_s18 = int_to_ptr.vmem [resolvable:$true] %s17_s18 }
   0x4   :  { %s450_s19 = scalar_lea.vmem %s30_s16, 1024  ;;  %p455_p1 = scmp.lt.s32.totalorder %s30_s16, %s30_s16 }
   0x5   :  { %p451_p0 = scmp.ne.s32.totalorder %s30_s16, %s450_s19  ;;  %p456_p2 = scmp.lt.s32.totalorder %s450_s19, %s450_s19 }
   0x7   :  { %p457_p3 = por %p456_p2, %p455_p1 }
   0x9   :  { %p458_p4 = pnand %p457_p3, %p451_p0 }
   0xb   :  { %461 = shalt.err (!%p458_p4)
}
   0xc   :  { %s530_s20 = smov 64   ;;  %s531_s21 = smov 4  }
   0xd   :  { %35 = dma.hbm_to_vmem [thread:$0]  %s577_s1, 1024, %s30_s16, [#allocation6], %s530_s20, %s530_s20, %s531_s21  }
   0xe   :  { %s470_s24 = scalar_lea.vmem %s18_s18, 256  ;;  %p475_p6 = scmp.lt.s32.totalorder %s18_s18, %s18_s18 }
   0xf   :  { %p471_p5 = scmp.ne.s32.totalorder %s18_s18, %s470_s24  ;;  %p476_p7 = scmp.lt.s32.totalorder %s470_s24, %s470_s24 }
  0x11   :  { %p477_p8 = por %p476_p7, %p475_p6 }
  0x13   :  { %p478_p9 = pnand %p477_p8, %p471_p5 }
  0x15   :  { %481 = shalt.err (!%p478_p9)
}
  0x16   :  { %23 = dma.hbm_to_vmem [thread:$0]  %s576_s0, 256, %s18_s18, [#allocation3], %s530_s20, %s530_s20, %s531_s21  }
  0x17   :  { %s532_s27 = smov [#allocation7]  }
  0x18   :  { %s43_s28 = sshll.u32 %s532_s27, 4  ;;  %s44_s28 = int_to_ptr.vmem [resolvable:$true] %s43_s28 }
  0x19   :  { %s490_s29 = scalar_lea.vmem %s44_s28, 1024  ;;  %p495_p11 = scmp.lt.s32.totalorder %s44_s28, %s44_s28 }
  0x1a   :  { %p491_p10 = scmp.ne.s32.totalorder %s44_s28, %s490_s29  ;;  %p496_p12 = scmp.lt.s32.totalorder %s490_s29, %s490_s29 }
  0x1c   :  { %p497_p13 = por %p496_p12, %p495_p11 }
  0x1e   :  { %p498_p0 = pnand %p497_p13, %p491_p10 }
  0x20   :  { %501 = shalt.err (!%p498_p0)
}
  0x21   :  { %49 = dma.hbm_to_vmem [thread:$0]  %s579_s3, 1024, %s44_s28, [#allocation6], %s530_s20, %s530_s20, %s531_s21  }
  0x22   :  { %522 = dma.done.wait [#allocation3], 256  }
  0x23   :  { %523 = vsyncadd [#allocation3], 4294967040 }
  0x24   :  { %524 = dma.done.wait [#allocation6], 2048  }
  0x25   :  { %525 = vsyncadd [#allocation6], 4294965248  ;;  %v424_v0 = vld [vmem:[#allocation5 + $0x38] sm:$0xff]   ;;  %v425_v1 = vld [vmem:[#allocation5 + $0x30] sm:$0xff]   ;;  %s533_s5 = smov [#allocation8]  }
  0x26   :  { %376 = vmatprep.subr.bf16.mxu0 %v424_v0  ;;  %v426_v2 = vld [vmem:[#allocation5 + $0x28] sm:$0xff]   ;;  %v427_v3 = vld [vmem:[#allocation5 + $0x20] sm:$0xff]   ;;  %v432_v4 = vld [vmem:[#allocation2] sm:$0xff]   ;;  %s324_s6 = sshll.u32 %s533_s5, 4  ;;  %s325_s6 = int_to_ptr.vmem [resolvable:$true] %s324_s6 }
  0x27   :  { %377 = vmatpush3.bf16.msra.mxu0 %v424_v0  ;;  %392 = vmatprep.mubr.bf16.mxu0 %v432_v4  ;;  %v434_v5 = vld [vmem:[#allocation7 + $0x38] sm:$0xff]   ;;  %v435_v6 = vld [vmem:[#allocation7 + $0x30] sm:$0xff]   ;;  %v436_v9 = vld [vmem:[#allocation7 + $0x28] sm:$0xff]   ;;  %p507_p2 = scmp.lt.s32.totalorder %s325_s6, %s325_s6 }
  0x28   :  { %378 = vmatprep.subr.bf16.mxu0 %v425_v1  ;;  %v428_v7 = vld [vmem:[#allocation5 + $0x18] sm:$0xff]   ;;  %396 = vmatprep.subr.bf16.mxu1 %v434_v5  ;;  %v429_v8 = vld [vmem:[#allocation5 + $0x10] sm:$0xff]   ;;  %v437_v10 = vld [vmem:[#allocation7 + $0x20] sm:$0xff]  }
  0x29   :  { %397 = vmatpush3.bf16.msra.mxu1 %v434_v5  ;;  %v430_v11 = vld [vmem:[#allocation5 + $0x8] sm:$0xff]   ;;  %v438_v12 = vld [vmem:[#allocation7 + $0x18] sm:$0xff]   ;;  %v431_v13 = vld [vmem:[#allocation5] sm:$0xff]  }
  0x2a   :  { %398 = vmatprep.subr.bf16.mxu1 %v435_v6  ;;  %v433_v14 = vld [vmem:[#allocation2 + $0x8] sm:$0xff]   ;;  %v439_v15 = vld [vmem:[#allocation7 + $0x10] sm:$0xff]   ;;  %v440_v16 = vld [vmem:[#allocation7 + $0x8] sm:$0xff]  }
  0x2b   :  { %379 = vmatpush3.bf16.msra.mxu0 %v425_v1  ;;  %v441_v17 = vld [vmem:[#allocation7] sm:$0xff]   ;;  %v337_v20 = vld [vmem:[%s578_s2] ss:$0 sm:$0xff]  ;;  %s502_s2 = scalar_lea.vmem %s325_s6, 512 }
  0x2c   :  { %380 = vmatprep.subr.bf16.mxu0 %v426_v2  ;;  %p503_p1 = scmp.ne.s32.totalorder %s325_s6, %s502_s2  ;;  %p508_p3 = scmp.lt.s32.totalorder %s502_s2, %s502_s2 }
  0x2d   :  { %399 = vmatpush3.bf16.msra.mxu1 %v435_v6 }
  0x2e   :  { %400 = vmatprep.subr.bf16.mxu1 %v436_v9  ;;  %p509_p4 = por %p508_p3, %p507_p2 }
  0x2f   :  { %381 = vmatpush3.bf16.msra.mxu0 %v426_v2 }
  0x30   :  { %382 = vmatprep.subr.bf16.mxu0 %v427_v3  ;;  %p510_p5 = pnand %p509_p4, %p503_p1 }
  0x31   :  { %401 = vmatpush3.bf16.msra.mxu1 %v436_v9 }
  0x32   :  { %402 = vmatprep.subr.bf16.mxu1 %v437_v10 }
  0x33   :  { %383 = vmatpush3.bf16.msra.mxu0 %v427_v3 }
  0x34   :  { %384 = vmatprep.subr.bf16.mxu0 %v428_v7 }
  0x35   :  { %403 = vmatpush3.bf16.msra.mxu1 %v437_v10 }
  0x36   :  { %404 = vmatprep.subr.bf16.mxu1 %v438_v12 }
  0x37   :  { %385 = vmatpush3.bf16.msra.mxu0 %v428_v7 }
  0x38   :  { %386 = vmatprep.subr.bf16.mxu0 %v429_v8 }
  0x39   :  { %405 = vmatpush3.bf16.msra.mxu1 %v438_v12 }
  0x3a   :  { %406 = vmatprep.subr.bf16.mxu1 %v439_v15 }
  0x3b   :  { %387 = vmatpush3.bf16.msra.mxu0 %v429_v8 }
  0x3c   :  { %388 = vmatprep.subr.bf16.mxu0 %v430_v11 }
  0x3d   :  { %407 = vmatpush3.bf16.msra.mxu1 %v439_v15 }
  0x3e   :  { %408 = vmatprep.subr.bf16.mxu1 %v440_v16 }
  0x3f   :  { %389 = vmatpush3.bf16.msra.mxu0 %v430_v11 }
  0x40   :  { %390 = vmatprep.subr.bf16.mxu0 %v431_v13 }
  0x41   :  { %409 = vmatpush3.bf16.msra.mxu1 %v440_v16 }
  0x42   :  { %410 = vmatprep.subr.bf16.mxu1 %v441_v17 }
  0x43   :  { %391 = vmatpush3.bf16.msra.mxu0 %v431_v13 }
  0x45   :  { %411 = vmatpush3.bf16.msra.mxu1 %v441_v17 }
  0x46   :  { %393 = vmatmul.mubr.bf16.vlgmr.msra.gmra.mxu0 %v433_v14 }
 0x106   :  { %v394_v18 = vpop.f32.mrf.mxu0 }
 0x107   :  { %v190_v24 = vadd.f32 %v394_v18, %v337_v20 }
 0x108   :  { %v181_v19 = vpop.f32.mrf.mxu0 }
 0x109   :  { %v182_v22 = vadd.f32 %v337_v20, %v181_v19  ;;  %v198_v30 = vmax.f32 %v190_v24, 0.0 }
 0x10a   :  { %v395_v21 = vpop.f32.mrf.mxu0 }
 0x10b   :  { %v193_v23 = vadd.f32 %v395_v21, %v337_v20  ;;  %v196_v28 = vmax.f32 %v182_v22, 0.0 }
 0x10c   :  { %v184_v25 = vpop.f32.mrf.mxu0 }
 0x10d   :  { %v185_v26 = vadd.f32 %v337_v20, %v184_v25  ;;  %v199_v27 = vmax.f32 %v193_v23, 0.0 }
 0x10f   :  { %v197_v29 = vmax.f32 %v185_v26, 0.0  ;;  %v201_v32 = vpack.c.bf16 %v199_v27, %v198_v30 }
 0x111   :  { %v200_v31 = vpack.c.bf16 %v197_v29, %v196_v28 }
 0x113   :  { %412 = vmatprep.mubr.bf16.mxu1 %v200_v31 }
 0x114   :  { %413 = vmatmul.mubr.bf16.vlgmr.msra.gmra.mxu1 %v201_v32 }
 0x1d4   :  { %v414_v33 = vpop.f32.mrf.mxu1 }
 0x1d5   :  { %317 = vst [vmem:[#allocation8 + $0x10] sm:$0xff] %v414_v33 }
 0x1d6   :  { %v300_v34 = vpop.f32.mrf.mxu1 }
 0x1d7   :  { %315 = vst [vmem:[#allocation8] sm:$0xff] %v300_v34 }
 0x1d8   :  { %v415_v35 = vpop.f32.mrf.mxu1 }
 0x1d9   :  { %318 = vst [vmem:[#allocation8 + $0x18] sm:$0xff] %v415_v35 }
 0x1da   :  { %v303_v36 = vpop.f32.mrf.mxu1 }
 0x1db   :  { %316 = vst [vmem:[#allocation8 + $0x8] sm:$0xff] %v303_v36 }
 0x1dc   :  { %513 = shalt.err (!%p510_p5)
}
 0x1dd   :  { %s534_s7 = smov 128   ;;  %s535_s8 = smov 8  }
 0x1de   :  { %330 = dma.vmem_to_hbm [thread:$0]  %s325_s6, 512, %s580_s4, [#allocation4], %s534_s7, %s534_s7, %s535_s8  }
 0x1df   :  { %526 = dma.done.wait [#allocation4], 512  }
 0x1e0   :  { %527 = vsyncadd [#allocation4], 4294966784 }
 0x1e1   :  { %334 = vsyncpa [#allocation3], 1 }
 0x1e2   :  { %335 = vsyncpa [#allocation6], 1 }
 0x1e3   :  { %336 = vsyncpa [#allocation4], 1 }

</bundles_post_ra>
